<compile_context>
chip_gen: v5e
topology: v5e:2x2
jax: 0.10.0
libtpu: 0.0.40
codegen_flags: <defaults>
</compile_context>

<pallas_src>
import functools

import jax
import jax.numpy as jnp
from jax.experimental import pallas as pl
from jax.experimental.pallas import tpu as pltpu

FEATURE_SIZE = 27
HIDDEN = 120

# sublane-aligned offsets inside the packed bias buffer
_B1_OFF, _B2_OFF, _B3_OFF, _BPACK = 0, 32, 160, 192


def _round_up(x, m):
    return ((x + m - 1) // m) * m


def _hfe_kernel(x_ref, w1_ref, w2_ref, w3_ref, b_ref, o_ref):
    # x_ref: (F, TB) bf16 input block, batch on the lane axis.
    # Weights are bf16, PyTorch (out, in) orientation.
    x = x_ref[...]                                            # (27, TB) bf16
    b = b_ref[...]                                            # (192, 1) f32
    b1 = b[_B1_OFF:_B1_OFF + FEATURE_SIZE]                    # (27, 1)
    b2 = b[_B2_OFF:_B2_OFF + HIDDEN]                          # (120, 1)
    b3 = b[_B3_OFF:_B3_OFF + FEATURE_SIZE]                    # (27, 1)

    # fc1: h = sigmoid(W1 @ x^T + b1)          (f32 accumulation, f32 sigmoid)
    h = jax.nn.sigmoid(
        jnp.dot(w1_ref[...], x, preferred_element_type=jnp.float32) + b1)
    # fc2 + residual: out = W3 @ sigmoid(W2 @ h + b2) + b3 + h
    t = jax.nn.sigmoid(
        jnp.dot(w2_ref[...], h.astype(jnp.bfloat16),
                preferred_element_type=jnp.float32) + b2)
    out = (jnp.dot(w3_ref[...], t.astype(jnp.bfloat16),
                   preferred_element_type=jnp.float32) + b3 + h)
    o_ref[...] = out.astype(o_ref.dtype)


def _reference(v_h, p):
    h = jax.nn.sigmoid(v_h @ p["w1"].T + p["b1"])
    t = jax.nn.sigmoid(h @ p["w2"].T + p["b2"])
    return t @ p["w3"].T + p["b3"] + h


@functools.partial(jax.jit, static_argnames=("block_b", "min_pallas_batch"))
def handcrafted_feature_extraction(v_h, params, block_b=8192,
                                   min_pallas_batch=1024):
    """params: PyTorch nn.Linear convention — weights (out, in), biases (out,)."""
    B, F = v_h.shape
    assert F == FEATURE_SIZE
    assert block_b % 128 == 0, "block_b must be a multiple of 128"

    # Small-B fast path: pallas_call fixed cost + transpose plumbing dominate;
    # a single fused XLA kernel is faster and exact (f32 end-to-end).
    if B < min_pallas_batch:
        return _reference(v_h, params)

    # --- Tiling -------------------------------------------------------------
    b_pad = _round_up(B, 128)                       # lane alignment only
    tb = _round_up(max(128, min(block_b, b_pad)), 128)
    if b_pad >= 256:
        # Keep >= 2 grid steps so the "parallel" batch axis can be split across
        # the two TensorCores on v7x (no-op on v5e/v6e).
        tb = min(tb, _round_up(-(-b_pad // 2), 128))
    grid = pl.cdiv(b_pad, tb)

    # --- Layout plumbing (single fused transpose + bf16 cast + 128-pad) ------
    # The kernel truncates x to bf16 anyway, so casting here loses nothing and
    # halves the streamed input bytes.
    x_t = jnp.zeros((F, b_pad), jnp.bfloat16).at[:, :B].set(
        v_h.astype(jnp.bfloat16).T)

    # (out, in) PyTorch weights are already oriented for W @ x^T; cast once.
    w1 = params["w1"].astype(jnp.bfloat16)       # (27, 27)
    w2 = params["w2"].astype(jnp.bfloat16)       # (120, 27)
    w3 = params["w3"].astype(jnp.bfloat16)       # (27, 120)

    # Pack the three biases into one column buffer at sublane-aligned offsets.
    b_pack = jnp.zeros((_BPACK, 1), jnp.float32)
    b_pack = b_pack.at[_B1_OFF:_B1_OFF + FEATURE_SIZE, 0].set(
        params["b1"].astype(jnp.float32))
    b_pack = b_pack.at[_B2_OFF:_B2_OFF + HIDDEN, 0].set(
        params["b2"].astype(jnp.float32))
    b_pack = b_pack.at[_B3_OFF:_B3_OFF + FEATURE_SIZE, 0].set(
        params["b3"].astype(jnp.float32))

    resident = lambda arr: pl.BlockSpec(arr.shape, lambda i: (0, 0))

    out_fb = pl.pallas_call(
        _hfe_kernel,
        out_shape=jax.ShapeDtypeStruct((F, b_pad), jnp.float32),
        grid=(grid,),
        in_specs=[
            pl.BlockSpec((F, tb), lambda i: (0, i)),   # streamed batch blocks
            resident(w1),
            resident(w2),
            resident(w3),
            resident(b_pack),
        ],
        out_specs=pl.BlockSpec((F, tb), lambda i: (0, i)),
        compiler_params=pltpu.CompilerParams(
            dimension_semantics=("parallel",),
        ),
    )(x_t, w1, w2, w3, b_pack)

    # Back to (B, F) batch-major; layout plumbing only.
    # TODO(synk): expose a feature-major (F, B) in/out path so producer/consumer
    # chains can skip this transpose entirely (biggest remaining HBM lever).
    return out_fb[:, :B].T.astype(v_h.dtype)


def _init_params(key):
    """Deterministic init mimicking PyTorch nn.Linear default (uniform ±1/sqrt(fan_in))."""
    ks = jax.random.split(key, 6)

    def lin(kw, kb, fan_in, fan_out):
        bound = 1.0 / jnp.sqrt(fan_in)
        w = jax.random.uniform(kw, (fan_out, fan_in), jnp.float32, -bound, bound)
        b = jax.random.uniform(kb, (fan_out,), jnp.float32, -bound, bound)
        return w, b

    w1, b1 = lin(ks[0], ks[1], FEATURE_SIZE, FEATURE_SIZE)
    w2, b2 = lin(ks[2], ks[3], FEATURE_SIZE, HIDDEN)
    w3, b3 = lin(ks[4], ks[5], HIDDEN, FEATURE_SIZE)
    return {"w1": w1, "b1": b1, "w2": w2, "b2": b2, "w3": w3, "b3": b3}


if __name__ == "__main__":
    key = jax.random.PRNGKey(0)
    k_x, k_x2, k_p = jax.random.split(key, 3)

    params = _init_params(k_p)

    # Small canonical case — force the Pallas path (min_pallas_batch=0).
    B = 8
    v_h = jax.random.normal(k_x, (B, FEATURE_SIZE), jnp.float32)
    out = jax.block_until_ready(
        handcrafted_feature_extraction(v_h, params, min_pallas_batch=0))
    ref = _reference(v_h, params)
    assert out.shape == (B, FEATURE_SIZE)
    assert jnp.allclose(out, ref, atol=2e-2, rtol=2e-2)

    # Multi-block path with a ragged (OOB, masked-write) last block:
    # B=300 -> b_pad=384, tb=256, grid=2, second block spans [256, 512).
    B2 = 300
    v_h2 = jax.random.normal(k_x2, (B2, FEATURE_SIZE), jnp.float32)
    out2 = jax.block_until_ready(
        handcrafted_feature_extraction(v_h2, params, block_b=256,
                                       min_pallas_batch=0))
    ref2 = _reference(v_h2, params)
    assert out2.shape == (B2, FEATURE_SIZE)
    assert jnp.allclose(out2, ref2, atol=2e-2, rtol=2e-2)

    # Small-B fast path (pure-XLA branch) — exact f32.
    out3 = jax.block_until_ready(handcrafted_feature_extraction(v_h, params))
    assert jnp.allclose(out3, ref, atol=1e-5, rtol=1e-5)

    print("KERNEL_OK")
</pallas_src>

<mosaic_0001>
module attributes {stable_mosaic.version = 11 : i64} {
  func.func @_hfe_kernel(%arg0: i32, %arg1: memref<27x128xbf16, #tpu.memory_space<vmem>>, %arg2: memref<27x27xbf16, #tpu.memory_space<vmem>>, %arg3: memref<120x27xbf16, #tpu.memory_space<vmem>>, %arg4: memref<27x120xbf16, #tpu.memory_space<vmem>>, %arg5: memref<192x1xf32, #tpu.memory_space<vmem>>, %arg6: memref<27x128xf32, #tpu.memory_space<vmem>>) attributes {dimension_semantics = [#tpu.dimension_semantics<parallel>], iteration_bounds = array<i64: 1>, scalar_prefetch = 0 : i64, scratch_operands = 0 : i64, tpu.core_type = #tpu.core_type<tc>, window_params = [{transform_indices = @transform_0, window_bounds = array<i64: 27, 128>}, {pipeline_mode = #tpu.pipeline_mode<synchronous>, transform_indices = @transform_1, window_bounds = array<i64: 27, 27>}, {pipeline_mode = #tpu.pipeline_mode<synchronous>, transform_indices = @transform_2, window_bounds = array<i64: 120, 27>}, {pipeline_mode = #tpu.pipeline_mode<synchronous>, transform_indices = @transform_3, window_bounds = array<i64: 27, 120>}, {pipeline_mode = #tpu.pipeline_mode<synchronous>, transform_indices = @transform_4, window_bounds = array<i64: 192, 1>}, {transform_indices = @transform_5, window_bounds = array<i64: 27, 128>}]} {
    %c0 = arith.constant 0 : index
    %c0_0 = arith.constant 0 : index
    %0 = vector.load %arg1[%c0, %c0_0] : memref<27x128xbf16, #tpu.memory_space<vmem>>, vector<27x128xbf16>
    %c0_1 = arith.constant 0 : index
    %c0_2 = arith.constant 0 : index
    %1 = vector.load %arg5[%c0_1, %c0_2] : memref<192x1xf32, #tpu.memory_space<vmem>>, vector<192x1xf32>
    %2 = vector.extract_strided_slice %1 {offsets = [0, 0], sizes = [27, 1], strides = [1, 1]} : vector<192x1xf32> to vector<27x1xf32>
    %3 = vector.extract_strided_slice %1 {offsets = [32, 0], sizes = [120, 1], strides = [1, 1]} : vector<192x1xf32> to vector<120x1xf32>
    %4 = vector.extract_strided_slice %1 {offsets = [160, 0], sizes = [27, 1], strides = [1, 1]} : vector<192x1xf32> to vector<27x1xf32>
    %c0_3 = arith.constant 0 : index
    %c0_4 = arith.constant 0 : index
    %5 = vector.load %arg2[%c0_3, %c0_4] : memref<27x27xbf16, #tpu.memory_space<vmem>>, vector<27x27xbf16>
    %cst = arith.constant dense<0.000000e+00> : vector<27x128xf32>
    %6 = tpu.matmul %5, %0, %cst {dimension_numbers = #tpu.dot_dimension_numbers<[1], [0], [0], [1], [0, 0, 1, 1], [], []>} : vector<27x27xbf16>, vector<27x128xbf16>, vector<27x128xf32> -> vector<27x128xf32>
    %7 = vector.broadcast %2 : vector<27x1xf32> to vector<27x128xf32>
    %8 = arith.addf %6, %7 : vector<27x128xf32>
    %9 = arith.negf %8 : vector<27x128xf32>
    %10 = math.exp %9 : vector<27x128xf32>
    %cst_5 = arith.constant 1.000000e+00 : f32
    %11 = vector.broadcast %cst_5 : f32 to vector<27x128xf32>
    %12 = arith.addf %11, %10 : vector<27x128xf32>
    %13 = arith.divf %11, %12 : vector<27x128xf32>
    %c0_6 = arith.constant 0 : index
    %c0_7 = arith.constant 0 : index
    %14 = vector.load %arg3[%c0_6, %c0_7] : memref<120x27xbf16, #tpu.memory_space<vmem>>, vector<120x27xbf16>
    %15 = arith.truncf %13 : vector<27x128xf32> to vector<27x128xbf16>
    %cst_8 = arith.constant dense<0.000000e+00> : vector<120x128xf32>
    %16 = tpu.matmul %14, %15, %cst_8 {dimension_numbers = #tpu.dot_dimension_numbers<[1], [0], [0], [1], [0, 0, 1, 1], [], []>} : vector<120x27xbf16>, vector<27x128xbf16>, vector<120x128xf32> -> vector<120x128xf32>
    %17 = vector.broadcast %3 : vector<120x1xf32> to vector<120x128xf32>
    %18 = arith.addf %16, %17 : vector<120x128xf32>
    %19 = arith.negf %18 : vector<120x128xf32>
    %20 = math.exp %19 : vector<120x128xf32>
    %cst_9 = arith.constant 1.000000e+00 : f32
    %21 = vector.broadcast %cst_9 : f32 to vector<120x128xf32>
    %22 = arith.addf %21, %20 : vector<120x128xf32>
    %23 = arith.divf %21, %22 : vector<120x128xf32>
    %c0_10 = arith.constant 0 : index
    %c0_11 = arith.constant 0 : index
    %24 = vector.load %arg4[%c0_10, %c0_11] : memref<27x120xbf16, #tpu.memory_space<vmem>>, vector<27x120xbf16>
    %25 = arith.truncf %23 : vector<120x128xf32> to vector<120x128xbf16>
    %cst_12 = arith.constant dense<0.000000e+00> : vector<27x128xf32>
    %26 = tpu.matmul %24, %25, %cst_12 {dimension_numbers = #tpu.dot_dimension_numbers<[1], [0], [0], [1], [0, 0, 1, 1], [], []>} : vector<27x120xbf16>, vector<120x128xbf16>, vector<27x128xf32> -> vector<27x128xf32>
    %27 = vector.broadcast %4 : vector<27x1xf32> to vector<27x128xf32>
    %28 = arith.addf %26, %27 : vector<27x128xf32>
    %29 = arith.addf %28, %13 : vector<27x128xf32>
    %c0_13 = arith.constant 0 : index
    %c0_14 = arith.constant 0 : index
    %30 = vector.load %arg6[%c0_13, %c0_14] : memref<27x128xf32, #tpu.memory_space<vmem>>, vector<27x128xf32>
    tpu.vector_store %arg6[%c0_13, %c0_14], %29 {strides = array<i32>} : memref<27x128xf32, #tpu.memory_space<vmem>>, vector<27x128xf32>,
    return
  }
  func.func @transform_0(%arg0: i32) -> (i32, i32) {
    %c0_i32 = arith.constant 0 : i32
    %c0_i32_0 = arith.constant 0 : i32
    return %c0_i32, %arg0 : i32, i32
  }
  func.func @transform_1(%arg0: i32) -> (i32, i32) {
    %c0_i32 = arith.constant 0 : i32
    %c0_i32_0 = arith.constant 0 : i32
    %c0_i32_1 = arith.constant 0 : i32
    return %c0_i32, %c0_i32_0 : i32, i32
  }
  func.func @transform_2(%arg0: i32) -> (i32, i32) {
    %c0_i32 = arith.constant 0 : i32
    %c0_i32_0 = arith.constant 0 : i32
    %c0_i32_1 = arith.constant 0 : i32
    return %c0_i32, %c0_i32_0 : i32, i32
  }
  func.func @transform_3(%arg0: i32) -> (i32, i32) {
    %c0_i32 = arith.constant 0 : i32
    %c0_i32_0 = arith.constant 0 : i32
    %c0_i32_1 = arith.constant 0 : i32
    return %c0_i32, %c0_i32_0 : i32, i32
  }
  func.func @transform_4(%arg0: i32) -> (i32, i32) {
    %c0_i32 = arith.constant 0 : i32
    %c0_i32_0 = arith.constant 0 : i32
    %c0_i32_1 = arith.constant 0 : i32
    return %c0_i32, %c0_i32_0 : i32, i32
  }
  func.func @transform_5(%arg0: i32) -> (i32, i32) {
    %c0_i32 = arith.constant 0 : i32
    %c0_i32_0 = arith.constant 0 : i32
    return %c0_i32, %arg0 : i32, i32
  }
}

</mosaic_0001>

<bundles_post_ra>
// kernel: handcrafted_feature_extraction.1
= control target key start
LH: loop header
LB: loop body
LE: loop exit
PB: predicated region body
PF: predicated region fallthrough
CT: control target
= control target key end

     0   :  { %vm100_vm0 = vcmask 1044480   ;;  %vm101_vm1 = vcmask 1045504   ;;  %v955_v0 = vmov 0   ;;  %v956_v4 = vmov 65535   ;;  %s1580_s4 = inlined_call_operand.vmem [shape: f32[192,1], index: 4, kind: input, shape index: {}]   ;;  %s1581_s0 = inlined_call_operand.vmem [shape: bf16[27,128], index: 0, kind: input, shape index: {}]   ;;  %s1582_s1 = inlined_call_operand.vmem [shape: bf16[27,27], index: 1, kind: input, shape index: {}]   ;;  %s1583_s2 = inlined_call_operand.vmem [shape: bf16[120,27], index: 2, kind: input, shape index: {}]   ;;  %s1584_s3 = inlined_call_operand.vmem [shape: bf16[27,120], index: 3, kind: input, shape index: {}]   ;;  %s1585_s5 = inlined_call_operand.vmem [shape: f32[27,128], index: 5, kind: output, shape index: {}]  }
   0x1   :  { %877 = vset.pattern.permute.xlu1 %v955_v0  ;;  %876 = vset.pattern.permute.xlu0 %v955_v0  ;;  %v27_v1 = vld [vmem:[%s1580_s4 + $0x10] sm:$0xff]  ;;  %v25_v2 = vld [vmem:[%s1580_s4] sm:$0xff]  ;;  %v790_v3 = vld [vmem:[%s1581_s0 + $0x8] sm:$0xf]  ;;  %v102_v5 = vsel %vm100_vm0, 4294967295, %v956_v4  ;;  %vm93_vm2 = vcmask 220160  }
   0x2   :  { %64 = vperm.xlu0 %876, %v27_v1   ;;  %54 = vperm.xlu1 %877, %v25_v2   ;;  %v860_v6 = vld [vmem:[%s1581_s0 + $0x8] sm:$0x30]  ;;  %v999_v7 = vsel %vm101_vm1, %v102_v5, 0  ;;  %v28_v10 = vld [vmem:[%s1580_s4 + $0x18] sm:$0xff]  ;;  %v859_v12 = vld [vmem:[%s1581_s0] sm:$0xff] }
   0x3   :  { %v791_v8 = vor.u32 %v860_v6, %v790_v3  ;;  %878 = vset.pattern.permute.xlu2 %v955_v0  ;;  %v26_v11 = vld [vmem:[%s1580_s4 + $0x8] sm:$0xff]  ;;  %v861_v13 = vld [vmem:[%s1582_s1] sm:$0xff]  ;;  %v39_v15 = vld [vmem:[%s1580_s4 + $0x70] sm:$0xff] }
   0x4   :  { %v42_v14 = vld [vmem:[%s1580_s4 + $0x88] sm:$0xff]  ;;  %v37_v16 = vld [vmem:[%s1580_s4 + $0x60] sm:$0xff]  ;;  %v36_v21 = vld [vmem:[%s1580_s4 + $0x58] sm:$0xff] }
   0x5   :  { %v105_v9 = vand.u32 %v791_v8, %v999_v7  ;;  %v38_v17 = vld [vmem:[%s1580_s4 + $0x68] sm:$0xff]  ;;  %v33_v22 = vld [vmem:[%s1580_s4 + $0x40] sm:$0xff]  ;;  %v31_v23 = vld [vmem:[%s1580_s4 + $0x30] sm:$0xff] }
   0x6   :  { %v782_v18 = vld [vmem:[%s1582_s1 + $0x8] sm:$0xf]  ;;  %v862_v19 = vld [vmem:[%s1582_s1 + $0x8] sm:$0x30]  ;;  %v32_v24 = vld [vmem:[%s1580_s4 + $0x38] sm:$0xff] }
   0x7   :  { %113 = vmatpush.bf16.msra.mxu0 %v105_v9  ;;  %v783_v20 = vor.u32 %v862_v19, %v782_v18  ;;  %v30_v25 = vld [vmem:[%s1580_s4 + $0x28] sm:$0xff]  ;;  %v44_v26 = vld [vmem:[%s1580_s4 + $0xa0] sm:$0xff]  ;;  %v46_v27 = vld [vmem:[%s1580_s4 + $0xb0] sm:$0xff] }
   0x8   :  { %v47_v28 = vld [vmem:[%s1580_s4 + $0xb8] sm:$0xff]  ;;  %v43_v50 = vld [vmem:[%s1580_s4 + $0x90] sm:$0xff]  ;;  %v41_v53 = vld [vmem:[%s1580_s4 + $0x80] sm:$0xff] }
   0x9   :  { %291 = vperm.xlu2 %878, %v43_v50   ;;  %v40_v62 = vld [vmem:[%s1580_s4 + $0x78] sm:$0xff] }
   0xa   :  { %69 = vperm.xlu0 %876, %v28_v10   ;;  %59 = vperm.xlu1 %877, %v26_v11  }
   0xb   :  { %114 = vmatpush.bf16.msra.mxu0 %v859_v12 }
   0xe   :  { %792 = vmatmul.msk.bf16.vlgmr.msra.gmra.mxu0 %vm93_vm2, %v861_v13 }
  0x11   :  { %281 = vperm.xlu2 %878, %v41_v53  }
  0x12   :  { %286 = vperm.xlu0 %876, %v42_v14   ;;  %271 = vperm.xlu1 %877, %v39_v15   ;;  %v35_v15 = vld [vmem:[%s1580_s4 + $0x50] sm:$0xff] }
  0x19   :  { %276 = vperm.xlu2 %878, %v40_v62  }
  0x1a   :  { %261 = vperm.xlu0 %876, %v37_v16   ;;  %266 = vperm.xlu1 %877, %v38_v17  }
  0x1e   :  { %793 = vmatmul.msk.bf16.gmra.mxu0 %vm93_vm2, %v783_v20 }
  0x21   :  { %251 = vperm.xlu2 %878, %v35_v15  }
  0x22   :  { %256 = vperm.xlu0 %876, %v36_v21   ;;  %241 = vperm.xlu1 %877, %v33_v22  }
  0x2a   :  { %231 = vperm.xlu0 %876, %v31_v23   ;;  %236 = vperm.xlu1 %877, %v32_v24  }
  0x32   :  { %226 = vperm.xlu0 %876, %v30_v25   ;;  %706 = vperm.xlu1 %877, %v44_v26  }
  0x3a   :  { %716 = vperm.xlu0 %876, %v46_v27   ;;  %721 = vperm.xlu1 %877, %v47_v28  }
  0x63   :  { %v1164_v50 = vpop.permute.xlu2 %291 }
  0x74   :  { %v55_v29 = vpop.permute.xlu1 %54  ;;  %v65_v36 = vpop.permute.xlu0 %64 }
  0x7c   :  { %v60_v31 = vpop.permute.xlu1 %59  ;;  %v70_v43 = vpop.permute.xlu0 %69 }
  0x8b   :  { %v116_v30 = vpop.f32.mrf.mxu0 }
  0x8c   :  { %v117_v34 = vadd.f32 %v116_v30, %v55_v29 }
  0x8e   :  { %v794_v37 = vmul.f32 -1.442695, %v117_v34  ;;  %v34_v34 = vld [vmem:[%s1580_s4 + $0x48] sm:$0xff] }
  0x8f   :  { %246 = vperm.xlu2 %878, %v34_v34  }
  0x93   :  { %v118_v32 = vpop.f32.mrf.mxu0 }
  0x94   :  { %v119_v33 = vadd.f32 %v118_v32, %v60_v31 }
  0x96   :  { %v795_v35 = vmul.f32 -1.442695, %v119_v33 }
  0x98   :  { %879 = vpow2.f32 %v795_v35 }
  0x99   :  { %881 = vpow2.f32 %v794_v37 }
  0x9b   :  { %v121_v38 = vpop.f32.mrf.mxu0 }
  0x9c   :  { %v122_v39 = vadd.f32 %v121_v38, %v65_v36 }
  0x9e   :  { %v796_v40 = vmul.f32 -1.442695, %v122_v39  ;;  %v880_v41 = vpop.eup %879  ;;  %v867_v39 = vld [vmem:[%s1583_s2 + $0x20] sm:$0xff] }
  0x9f   :  { %v882_v42 = vpop.eup %881  ;;  %v1058_v44 = vadd.f32 1.0, %v880_v41  ;;  %v864_v41 = vld [vmem:[%s1583_s2 + $0x8] sm:$0xff] }
  0xa0   :  { %883 = vpow2.f32 %v796_v40  ;;  %v1060_v48 = vadd.f32 1.0, %v882_v42  ;;  %v29_v40 = vld [vmem:[%s1580_s4 + $0x20] sm:$0xff]  ;;  %v868_v42 = vld [vmem:[%s1583_s2 + $0x28] sm:$0xff] }
  0xa1   :  { %885 = vrcp.f32 %v1058_v44  ;;  %vm162_vm8 = vweird.f32 %v1058_v44  ;;  %v166_v21 = vand.u32 2147483647, %v1058_v44  ;;  %v168_v22 = vand.u32 2147483648, %v1058_v44  ;;  %221 = vperm.xlu2 %878, %v29_v40  }
  0xa2   :  { %v153_v27 = vand.u32 2147483648, %v1060_v48  ;;  %vm147_vm15 = vweird.f32 %v1060_v48  ;;  %v151_v29 = vand.u32 2147483647, %v1060_v48 }
  0xa3   :  { %v123_v45 = vpop.f32.mrf.mxu0  ;;  %v169_v31 = vor.u32 1.1754944e-38, %v168_v22  ;;  %vm167_vm1 = vcmp.eq.f32.partialorder %v166_v21, 8.507059e+37 }
  0xa4   :  { %v124_v46 = vadd.f32 %v123_v45, %v70_v43  ;;  %v154_v35 = vor.u32 1.1754944e-38, %v153_v27  ;;  %v45_v43 = vld [vmem:[%s1580_s4 + $0xa8] sm:$0xff]  ;;  %v869_v45 = vld [vmem:[%s1583_s2 + $0x30] sm:$0xff] }
  0xa6   :  { %v884_v47 = vpop.eup %883  ;;  %v797_v49 = vmul.f32 -1.442695, %v124_v46  ;;  %v216_v46 = vld [vmem:[%s1583_s2 + $0x38] sm:$0xf] }
  0xa7   :  { %v140_v51 = vadd.f32 1.0, %v884_v47  ;;  %v1067_v52 = vpop.eup %885  ;;  %v323_v47 = vunpack.c.l.b16 %v216_v46 }
  0xa8   :  { %887 = vpow2.f32 %v797_v49  ;;  %v158_v60 = vmul.f32 %v1067_v52, %v1058_v44  ;;  %vm163_vm9 = vweird.f32 %v1067_v52  ;;  %v865_v44 = vld [vmem:[%s1583_s2 + $0x10] sm:$0xff] }
  0xa9   :  { %889 = vrcp.f32 %v140_v51  ;;  %vm177_vm4 = vweird.f32 %v140_v51  ;;  %v183_v8 = vand.u32 2147483648, %v140_v51  ;;  %v181_v11 = vand.u32 2147483647, %v140_v51  ;;  %vm164_vm14 = vmor %vm162_vm8, %vm163_vm9  ;;  %711 = vperm.xlu2 %878, %v45_v43  }
  0xaa   :  { %891 = vrcp.f32 %v1060_v48  ;;  %v159_v0 = vsub.f32 1.0, %v158_v60  ;;  %v331_v49 = vpack.c.b16 %v323_v47, %v323_v47  ;;  %v272_v60 = vpop.permute.xlu1 %271 }
  0xab   :  { %v184_v19 = vor.u32 1.1754944e-38, %v183_v8  ;;  %vm182_vm12 = vcmp.eq.f32.partialorder %v181_v11, 8.507059e+37 }
  0xac   :  { %v160_v6 = vmul.f32 %v1067_v52, %v159_v0 }
  0xae   :  { %v888_v54 = vpop.eup %887  ;;  %v161_v18 = vadd.f32 %v1067_v52, %v160_v6 }
  0xaf   :  { %v890_v55 = vpop.eup %889  ;;  %v141_v56 = vadd.f32 1.0, %v888_v54 }
  0xb0   :  { %v1072_v57 = vpop.eup %891  ;;  %v173_v58 = vmul.f32 %v890_v55, %v140_v51  ;;  %vm178_vm3 = vweird.f32 %v890_v55  ;;  %v165_v30 = vsel %vm164_vm14, %v1067_v52, %v161_v18  ;;  %v282_v51 = vpop.permute.xlu2 %281 }
  0xb1   :  { %893 = vrcp.f32 %v141_v56  ;;  %v143_v61 = vmul.f32 %v1072_v57, %v1060_v48  ;;  %v198_v9 = vand.u32 2147483648, %v141_v56  ;;  %v196_v13 = vand.u32 2147483647, %v141_v56  ;;  %vm1083_vm6 = vmor %vm177_vm4, %vm178_vm3  ;;  %v866_v48 = vld [vmem:[%s1583_s2 + $0x18] sm:$0xff]  ;;  %v287_v52 = vpop.permute.xlu0 %286 }
  0xb2   :  { %v174_v59 = vsub.f32 1.0, %v173_v58  ;;  %vm148_vm7 = vweird.f32 %v1072_v57  ;;  %vm192_vm10 = vweird.f32 %v141_v56  ;;  %v1120_v36 = vsel %vm167_vm1, %v169_v31, %v165_v30 }
  0xb3   :  { %v144_v2 = vsub.f32 1.0, %v143_v61  ;;  %v199_v20 = vor.u32 1.1754944e-38, %v198_v9  ;;  %vm197_vm13 = vcmp.eq.f32.partialorder %v196_v13, 8.507059e+37  ;;  %vm149_vm0 = vmor %vm147_vm15, %vm148_vm7  ;;  %vm152_vm3 = vcmp.eq.f32.partialorder %v151_v29, 8.507059e+37 }
  0xb4   :  { %v175_v63 = vmul.f32 %v890_v55, %v174_v59 }
  0xb5   :  { %v145_v10 = vmul.f32 %v1072_v57, %v144_v2  ;;  %v267_v2 = vpop.permute.xlu1 %266 }
  0xb6   :  { %v176_v4 = vadd.f32 %v890_v55, %v175_v63 }
  0xb7   :  { %v894_v1 = vpop.eup %893  ;;  %v146_v24 = vadd.f32 %v1072_v57, %v145_v10 }
  0xb8   :  { %v188_v3 = vmul.f32 %v894_v1, %v141_v56  ;;  %vm193_vm5 = vweird.f32 %v894_v1  ;;  %v180_v16 = vsel %vm1083_vm6, %v890_v55, %v176_v4  ;;  %v277_v53 = vpop.permute.xlu2 %276 }
  0xb9   :  { %vm194_vm11 = vmor %vm192_vm10, %vm193_vm5  ;;  %v1099_v25 = vsel %vm182_vm12, %v184_v19, %v180_v16  ;;  %v150_v33 = vsel %vm149_vm0, %v1072_v57, %v146_v24  ;;  %v262_v54 = vpop.permute.xlu0 %261 }
  0xba   :  { %v189_v5 = vsub.f32 1.0, %v188_v3  ;;  %v1122_v37 = vsel %vm152_vm3, %v154_v35, %v150_v33 }
  0xbb   :  { %v217_v38 = vpack.c.bf16 %v1120_v36, %v1122_v37 }
  0xbc   :  { %v190_v12 = vmul.f32 %v894_v1, %v189_v5 }
  0xbe   :  { %v191_v17 = vadd.f32 %v894_v1, %v190_v12 }
  0xc0   :  { %v195_v23 = vsel %vm194_vm11, %v894_v1, %v191_v17  ;;  %v1166_v56 = vpop.permute.xlu2 %251  ;;  %v242_v17 = vpop.permute.xlu1 %241 }
  0xc1   :  { %v1101_v26 = vsel %vm197_vm13, %v199_v20, %v195_v23  ;;  %v1168_v59 = vpop.permute.xlu0 %256  ;;  %vm741_vm13 = vcmask 1043456  }
  0xc2   :  { %v218_v28 = vpack.c.bf16 %v1101_v26, %v1099_v25 }
  0xc4   :  { %v357_v32 = vand.u32 %v218_v28, %v999_v7  ;;  %v863_v7 = vld [vmem:[%s1583_s2] sm:$0xff] }
  0xc6   :  { %365 = vmatpush.bf16.msra.mxu1 %v357_v32  ;;  %872 = vmatpush.bf16.msra.mxu3 %v357_v32 }
  0xc8   :  { %v237_v34 = vpop.permute.xlu1 %236 }
  0xc9   :  { %v232_v0 = vpop.permute.xlu0 %231 }
  0xca   :  { %366 = vmatpush.bf16.msra.mxu1 %v217_v38  ;;  %873 = vmatpush.bf16.msra.mxu3 %v217_v38 }
  0xcd   :  { %826 = vmatmul.msk.bf16.vlgmr.msra.gmra.mxu1 %vm93_vm2, %v863_v7  ;;  %830 = vmatmul.msk.bf16.vlgmr.msra.gmra.mxu3 %vm93_vm2, %v867_v39 }
  0xd1   :  { %v227_v10 = vpop.permute.xlu0 %226 }
  0xdd   :  { %827 = vmatmul.msk.bf16.gmra.mxu1 %vm93_vm2, %v864_v41  ;;  %831 = vmatmul.msk.bf16.gmra.mxu3 %vm93_vm2, %v868_v42 }
  0xe9   :  { %v1170_v62 = vpop.permute.xlu2 %246 }
  0xed   :  { %828 = vmatmul.msk.bf16.gmra.mxu1 %vm93_vm2, %v865_v44  ;;  %832 = vmatmul.msk.bf16.gmra.mxu3 %vm93_vm2, %v869_v45 }
  0xfb   :  { %v222_v4 = vpop.permute.xlu2 %221 }
  0xfd   :  { %829 = vmatmul.msk.bf16.gmra.mxu1 %vm93_vm2, %v866_v48  ;;  %833 = vmatmul.msk.bf16.gmra.mxu3 %vm93_vm2, %v331_v49 }
 0x14a   :  { %v368_v55 = vpop.f32.mrf.mxu1 }
 0x14b   :  { %v369_v6 = vadd.f32 %v368_v55, %v222_v4 }
 0x14d   :  { %v834_v13 = vmul.f32 -1.442695, %v369_v6 }
 0x150   :  { %v388_v57 = vpop.f32.mrf.mxu3 }
 0x151   :  { %v389_v5 = vadd.f32 %v388_v57, %v262_v54 }
 0x152   :  { %v370_v58 = vpop.f32.mrf.mxu1 }
 0x153   :  { %v842_v8 = vmul.f32 -1.442695, %v389_v5  ;;  %v371_v12 = vadd.f32 %v370_v58, %v227_v10 }
 0x155   :  { %895 = vpow2.f32 %v842_v8  ;;  %v835_v19 = vmul.f32 -1.442695, %v371_v12 }
 0x156   :  { %897 = vpow2.f32 %v834_v13 }
 0x158   :  { %v390_v61 = vpop.f32.mrf.mxu3 }
 0x159   :  { %v391_v9 = vadd.f32 %v390_v61, %v267_v2 }
 0x15a   :  { %v373_v63 = vpop.f32.mrf.mxu1 }
 0x15b   :  { %v843_v15 = vmul.f32 -1.442695, %v391_v9  ;;  %v374_v16 = vadd.f32 %v373_v63, %v232_v0  ;;  %v896_v24 = vpop.eup %895 }
 0x15c   :  { %v898_v31 = vpop.eup %897  ;;  %v1172_v32 = vadd.f32 1.0, %v896_v24 }
 0x15d   :  { %899 = vpow2.f32 %v843_v15  ;;  %v836_v21 = vmul.f32 -1.442695, %v374_v16  ;;  %v1174_v38 = vadd.f32 1.0, %v898_v31 }
 0x15e   :  { %901 = vpow2.f32 %v835_v19  ;;  %v596_v16 = vand.u32 2147483647, %v1172_v32  ;;  %v598_v19 = vand.u32 2147483648, %v1172_v32  ;;  %vm592_vm2 = vweird.f32 %v1172_v32 }
 0x15f   :  { %903 = vpow2.f32 %v836_v21 }
 0x160   :  { %v393_v1 = vpop.f32.mrf.mxu3  ;;  %vm1232_vm4 = vcmp.eq.f32.partialorder %v596_v16, 8.507059e+37 }
 0x161   :  { %v394_v18 = vadd.f32 %v393_v1, %v272_v60 }
 0x162   :  { %v375_v3 = vpop.f32.mrf.mxu1 }
 0x163   :  { %v844_v22 = vmul.f32 -1.442695, %v394_v18  ;;  %v900_v33 = vpop.eup %899  ;;  %v376_v7 = vadd.f32 %v375_v3, %v237_v34 }
 0x164   :  { %v902_v35 = vpop.eup %901  ;;  %v1177_v39 = vadd.f32 1.0, %v900_v33 }
 0x165   :  { %905 = vpow2.f32 %v844_v22  ;;  %v904_v41 = vpop.eup %903  ;;  %v1179_v44 = vadd.f32 1.0, %v902_v35  ;;  %v837_v47 = vmul.f32 -1.442695, %v376_v7  ;;  %v599_v35 = vor.u32 1.1754944e-38, %v598_v19 }
 0x166   :  { %v613_v31 = vand.u32 2147483648, %v1177_v39  ;;  %vm607_vm6 = vweird.f32 %v1177_v39 }
 0x168   :  { %v395_v11 = vpop.f32.mrf.mxu3 }
 0x169   :  { %v396_v20 = vadd.f32 %v395_v11, %v277_v53 }
 0x16a   :  { %v378_v14 = vpop.f32.mrf.mxu1 }
 0x16b   :  { %v845_v27 = vmul.f32 -1.442695, %v396_v20  ;;  %v906_v43 = vpop.eup %905 }
 0x16c   :  { %v1186_v54 = vadd.f32 1.0, %v906_v43 }
 0x16d   :  { %907 = vpow2.f32 %v845_v27 }
 0x16e   :  { %vm622_vm14 = vweird.f32 %v1186_v54 }
 0x170   :  { %v398_v23 = vpop.f32.mrf.mxu3 }
 0x171   :  { %v399_v28 = vadd.f32 %v398_v23, %v282_v51  ;;  %v1183_v51 = vadd.f32 1.0, %v904_v41 }
 0x172   :  { %v380_v29 = vpop.f32.mrf.mxu1 }
 0x173   :  { %v846_v30 = vmul.f32 -1.442695, %v399_v28  ;;  %v908_v46 = vpop.eup %907  ;;  %v381_v58 = vadd.f32 %v380_v29, %v1170_v62 }
 0x174   :  { %v1191_v55 = vadd.f32 1.0, %v908_v46 }
 0x175   :  { %909 = vpow2.f32 %v846_v30  ;;  %v839_v8 = vmul.f32 -1.442695, %v381_v58 }
 0x176   :  { %911 = vrcp.f32 %v1172_v32  ;;  %vm637_vm12 = vweird.f32 %v1191_v55 }
 0x177   :  { %913 = vrcp.f32 %v1174_v38 }
 0x178   :  { %v400_v40 = vpop.f32.mrf.mxu3  ;;  %915 = vrcp.f32 %v1177_v39 }
 0x179   :  { %v401_v42 = vadd.f32 %v400_v40, %v287_v52 }
 0x17a   :  { %v383_v45 = vpop.f32.mrf.mxu1 }
 0x17b   :  { %v847_v48 = vmul.f32 -1.442695, %v401_v42  ;;  %v910_v49 = vpop.eup %909  ;;  %v384_v53 = vadd.f32 %v383_v45, %v1166_v56  ;;  %v379_v56 = vadd.f32 %v378_v14, %v242_v17 }
 0x17c   :  { %v1188_v52 = vpop.eup %911  ;;  %v1193_v57 = vadd.f32 1.0, %v910_v49 }
 0x17d   :  { %917 = vpow2.f32 %v847_v48  ;;  %v840_v60 = vmul.f32 -1.442695, %v384_v53  ;;  %v1197_v63 = vpop.eup %913  ;;  %v588_v1 = vmul.f32 %v1188_v52, %v1172_v32  ;;  %v838_v11 = vmul.f32 -1.442695, %v379_v56 }
 0x17e   :  { %919 = vrcp.f32 %v1179_v44  ;;  %v1203_v2 = vpop.eup %915  ;;  %vm593_vm5 = vweird.f32 %v1188_v52  ;;  %vm652_vm11 = vweird.f32 %v1193_v57 }
 0x17f   :  { %921 = vpow2.f32 %v837_v47  ;;  %v589_v13 = vsub.f32 1.0, %v588_v1  ;;  %vm1271_vm7 = vmor %vm592_vm2, %vm593_vm5  ;;  %vm608_vm8 = vweird.f32 %v1203_v2 }
 0x180   :  { %923 = vrcp.f32 %v1183_v51  ;;  %v403_v61 = vpop.f32.mrf.mxu3  ;;  %vm1309_vm9 = vmor %vm607_vm6, %vm608_vm8 }
 0x181   :  { %925 = vrcp.f32 %v1186_v54  ;;  %v404_v0 = vadd.f32 %v403_v61, %v1164_v50  ;;  %v468_v50 = vmul.f32 %v1197_v63, %v1174_v38  ;;  %v590_v21 = vmul.f32 %v1188_v52, %v589_v13 }
 0x182   :  { %927 = vrcp.f32 %v1191_v55  ;;  %v385_v3 = vpop.f32.mrf.mxu1  ;;  %v1261_v61 = vor.u32 1.1754944e-38, %v613_v31  ;;  %v628_v13 = vand.u32 2147483648, %v1186_v54 }
 0x183   :  { %v918_v4 = vpop.eup %917  ;;  %929 = vrcp.f32 %v1193_v57  ;;  %v848_v62 = vmul.f32 -1.442695, %v404_v0  ;;  %v386_v5 = vadd.f32 %v385_v3, %v1168_v59  ;;  %v603_v59 = vmul.f32 %v1203_v2, %v1177_v39 }
 0x184   :  { %v1208_v6 = vpop.eup %919  ;;  %v1210_v9 = vadd.f32 1.0, %v918_v4  ;;  %931 = vpow2.f32 %v840_v60  ;;  %v469_v22 = vsub.f32 1.0, %v468_v50  ;;  %v591_v42 = vadd.f32 %v1188_v52, %v590_v21 }
 0x185   :  { %v922_v10 = vpop.eup %921  ;;  %933 = vpow2.f32 %v848_v62  ;;  %v841_v12 = vmul.f32 -1.442695, %v386_v5  ;;  %v604_v24 = vsub.f32 1.0, %v603_v59  ;;  %v1244_v40 = vmul.f32 %v1208_v6, %v1179_v44 }
 0x186   :  { %v1214_v14 = vpop.eup %923  ;;  %935 = vrcp.f32 %v1210_v9  ;;  %v1250_v43 = vmul.f32 %v1197_v63, %v469_v22  ;;  %v611_v60 = vand.u32 2147483647, %v1177_v39  ;;  %v1263_v56 = vadd.f32 1.0, %v922_v10 }
 0x187   :  { %v1219_v15 = vpop.eup %925  ;;  %937 = vpow2.f32 %v841_v12  ;;  %v605_v48 = vmul.f32 %v1203_v2, %v604_v24  ;;  %v1277_v3 = vmul.f32 %v1214_v14, %v1183_v51  ;;  %v484_v4 = vsub.f32 1.0, %v1244_v40 }
 0x188   :  { %v1222_v17 = vpop.eup %927  ;;  %939 = vpow2.f32 %v839_v8  ;;  %v405_v18 = vpop.f32.mrf.mxu3  ;;  %v618_v29 = vmul.f32 %v1219_v15, %v1186_v54  ;;  %v595_v32 = vsel %vm1271_vm7, %v1188_v52, %v591_v42  ;;  %v626_v12 = vand.u32 2147483647, %v1186_v54 }
 0x189   :  { %v1225_v20 = vpop.eup %929  ;;  %941 = vpow2.f32 %v838_v11  ;;  %v633_v5 = vmul.f32 %v1222_v17, %v1191_v55  ;;  %v1291_v10 = vadd.f32 %v1203_v2, %v605_v48  ;;  %v1301_v16 = vsel %vm1232_vm4, %v599_v35, %v595_v32 }
 0x18a   :  { %v932_v23 = vpop.eup %931  ;;  %v619_v58 = vsub.f32 1.0, %v618_v29  ;;  %v648_v0 = vmul.f32 %v1225_v20, %v1193_v57  ;;  %v499_v18 = vsub.f32 1.0, %v1277_v3  ;;  %v641_v22 = vand.u32 2147483647, %v1191_v55 }
 0x18b   :  { %v934_v28 = vpop.eup %933  ;;  %v1258_v53 = vadd.f32 1.0, %v932_v23  ;;  %v634_v21 = vsub.f32 1.0, %v633_v5  ;;  %vm623_vm10 = vweird.f32 %v1219_v15  ;;  %v610_v29 = vsel %vm1309_vm9, %v1203_v2, %v1291_v10 }
 0x18c   :  { %v1237_v33 = vpop.eup %935  ;;  %v1239_v34 = vadd.f32 1.0, %v934_v28  ;;  %v620_v11 = vmul.f32 %v1219_v15, %v619_v58  ;;  %v649_v52 = vsub.f32 1.0, %v648_v0  ;;  %v643_v28 = vand.u32 2147483648, %v1191_v55 }
 0x18d   :  { %v938_v41 = vpop.eup %937  ;;  %v663_v47 = vmul.f32 %v1237_v33, %v1210_v9  ;;  %v656_v35 = vand.u32 2147483647, %v1193_v57  ;;  %v635_v0 = vmul.f32 %v1222_v17, %v634_v21  ;;  %vm653_vm0 = vweird.f32 %v1225_v20 }
 0x18e   :  { %v940_v45 = vpop.eup %939  ;;  %943 = vrcp.f32 %v1239_v34  ;;  %v1253_v46 = vadd.f32 1.0, %v938_v41  ;;  %v1326_v41 = vadd.f32 %v1219_v15, %v620_v11  ;;  %v688_v42 = vand.u32 2147483648, %v1239_v34 }
 0x18f   :  { %v942_v49 = vpop.eup %941  ;;  %v1280_v62 = vadd.f32 1.0, %v940_v45  ;;  %v664_v50 = vsub.f32 1.0, %v663_v47  ;;  %v650_v45 = vmul.f32 %v1225_v20, %v649_v52  ;;  %v658_v47 = vand.u32 2147483648, %v1193_v57 }
 0x190   :  { %945 = vrcp.f32 %v1253_v46  ;;  %v1288_v8 = vadd.f32 1.0, %v942_v49  ;;  %v686_v58 = vand.u32 2147483647, %v1239_v34  ;;  %vm668_vm1 = vweird.f32 %v1237_v33 }
 0x191   :  { %947 = vrcp.f32 %v1258_v53  ;;  %v665_v24 = vmul.f32 %v1237_v33, %v664_v50  ;;  %vm682_vm3 = vweird.f32 %v1239_v34  ;;  %vm667_vm2 = vweird.f32 %v1210_v9 }
 0x192   :  { %949 = vrcp.f32 %v1263_v56  ;;  %v673_v52 = vand.u32 2147483648, %v1210_v9  ;;  %v689_v21 = vor.u32 1.1754944e-38, %v688_v42  ;;  %vm1355_vm5 = vcmp.eq.f32.partialorder %v611_v60, 8.507059e+37  ;;  %vm1363_vm7 = vmor %vm667_vm2, %vm668_vm1 }
 0x193   :  { %951 = vrcp.f32 %v1280_v62  ;;  %v666_v5 = vadd.f32 %v1237_v33, %v665_v24  ;;  %v651_v24 = vadd.f32 %v1225_v20, %v650_v45  ;;  %vm687_vm6 = vcmp.eq.f32.partialorder %v686_v58, 8.507059e+37 }
 0x194   :  { %v944_v59 = vpop.eup %943  ;;  %953 = vrcp.f32 %v1288_v8  ;;  %v636_v42 = vadd.f32 %v1222_v17, %v635_v0  ;;  %vm638_vm8 = vweird.f32 %v1222_v17  ;;  %v674_v0 = vor.u32 1.1754944e-38, %v673_v52 }
 0x195   :  { %v678_v19 = vmul.f32 %v944_v59, %v1239_v34  ;;  %vm683_vm15 = vweird.f32 %v944_v59  ;;  %v500_v55 = vmul.f32 %v1214_v14, %v499_v18  ;;  %v1433_v54 = vmul.f32 %v1208_v6, %v484_v4 }
 0x196   :  { %v1321_v30 = vpop.eup %945  ;;  %vm684_vm4 = vmor %vm682_vm3, %vm683_vm15  ;;  %v583_v7 = vand.u32 2147483648, %v1253_v46  ;;  %vm532_vm9 = vweird.f32 %v1288_v8  ;;  %vm577_vm2 = vweird.f32 %v1253_v46  ;;  %v581_v3 = vand.u32 2147483647, %v1253_v46 }
 0x197   :  { %v679_v31 = vsub.f32 1.0, %v678_v19  ;;  %v1333_v48 = vpop.eup %947  ;;  %v573_v32 = vmul.f32 %v1321_v30, %v1253_v46  ;;  %vm1378_vm15 = vmor %vm652_vm11, %vm653_vm0  ;;  %v566_v18 = vand.u32 2147483647, %v1258_v53  ;;  %v551_v58 = vand.u32 2147483647, %v1280_v62 }
 0x198   :  { %v1337_v1 = vpop.eup %949  ;;  %v558_v34 = vmul.f32 %v1333_v48, %v1258_v53  ;;  %v655_v27 = vsel %vm1378_vm15, %v1225_v20, %v651_v24  ;;  %vm1389_vm3 = vmor %vm637_vm12, %vm638_vm8  ;;  %vm657_vm12 = vcmp.eq.f32.partialorder %v656_v35, 8.507059e+37  ;;  %vm563_vm0 = vweird.f32 %v1333_v48 }
 0x199   :  { %v680_v49 = vmul.f32 %v944_v59, %v679_v31  ;;  %v1344_v50 = vpop.eup %951  ;;  %v671_v31 = vand.u32 2147483647, %v1210_v9  ;;  %v670_v9 = vsel %vm1363_vm7, %v1237_v33, %v666_v5  ;;  %v574_v60 = vsub.f32 1.0, %v573_v32  ;;  %vm1400_vm11 = vmor %vm622_vm14, %vm623_vm10 }
 0x19a   :  { %v1349_v19 = vpop.eup %953  ;;  %v559_v57 = vsub.f32 1.0, %v558_v34  ;;  %v513_v5 = vmul.f32 %v1337_v1, %v1263_v56  ;;  %v659_v32 = vor.u32 1.1754944e-38, %v658_v47  ;;  %v640_v24 = vsel %vm1389_vm3, %v1222_v17, %v636_v42 }
 0x19b   :  { %v681_v11 = vadd.f32 %v944_v59, %v680_v49  ;;  %vm672_vm1 = vcmp.eq.f32.partialorder %v671_v31, 8.507059e+37  ;;  %v625_v47 = vsel %vm1400_vm11, %v1219_v15, %v1326_v41  ;;  %v575_v31 = vmul.f32 %v1321_v30, %v574_v60 }
 0x19c   :  { %v675_v52 = vsel %vm672_vm1, %v674_v0, %v670_v9  ;;  %vm642_vm10 = vcmp.eq.f32.partialorder %v641_v22, 8.507059e+37  ;;  %v560_v35 = vmul.f32 %v1333_v48, %v559_v57  ;;  %v615_v15 = vsel %vm1355_vm5, %v1261_v61, %v610_v29 }
 0x19d   :  { %v685_v49 = vsel %vm684_vm4, %v944_v59, %v681_v11  ;;  %v543_v59 = vmul.f32 %v1344_v50, %v1280_v62  ;;  %v644_v11 = vor.u32 1.1754944e-38, %v643_v28  ;;  %vm578_vm14 = vweird.f32 %v1321_v30 }
 0x19e   :  { %v690_v39 = vsel %vm687_vm6, %v689_v21, %v685_v49  ;;  %v528_v21 = vmul.f32 %v1349_v19, %v1288_v8  ;;  %v660_v49 = vsel %vm657_vm12, %v659_v32, %v655_v27  ;;  %v514_v10 = vsub.f32 1.0, %v513_v5  ;;  %vm1453_vm7 = vmor %vm577_vm2, %vm578_vm14 }
 0x19f   :  { %v703_v45 = vpack.c.bf16 %v690_v39, %v690_v39  ;;  %v544_v34 = vsub.f32 1.0, %v543_v59  ;;  %v629_v39 = vor.u32 1.1754944e-38, %v628_v13  ;;  %v645_v17 = vsel %vm642_vm10, %v644_v11, %v640_v24 }
 0x1a0   :  { %v529_v9 = vsub.f32 1.0, %v528_v21  ;;  %v561_v40 = vadd.f32 %v1333_v48, %v560_v35  ;;  %vm503_vm4 = vweird.f32 %v1214_v14  ;;  %vm517_vm5 = vweird.f32 %v1263_v56 }
 0x1a1   :  { %v743_v28 = vsel %vm741_vm13, %v703_v45, 0  ;;  %v702_v45 = vpack.c.bf16 %v675_v52, %v660_v49  ;;  %vm627_vm13 = vcmp.eq.f32.partialorder %v626_v12, 8.507059e+37  ;;  %v576_v12 = vadd.f32 %v1321_v30, %v575_v31 }
 0x1a2   :  { %745 = vmatpush.bf16.msra.mxu2 %v743_v28  ;;  %v630_v42 = vsel %vm627_vm13, %v629_v39, %v625_v47  ;;  %v545_v2 = vmul.f32 %v1344_v50, %v544_v34  ;;  %v530_v61 = vmul.f32 %v1349_v19, %v529_v9  ;;  %v700_v4 = vpack.c.bf16 %v615_v15, %v1301_v16 }
 0x1a3   :  { %v701_v13 = vpack.c.bf16 %v645_v17, %v630_v42  ;;  %vm562_vm6 = vweird.f32 %v1258_v53  ;;  %v568_v22 = vand.u32 2147483648, %v1258_v53  ;;  %vm472_vm8 = vweird.f32 %v1174_v38 }
 0x1a4   :  { %vm473_vm15 = vweird.f32 %v1197_v63  ;;  %v580_v46 = vsel %vm1453_vm7, %v1321_v30, %v576_v12  ;;  %v546_v16 = vadd.f32 %v1344_v50, %v545_v2  ;;  %vm548_vm1 = vweird.f32 %v1344_v50  ;;  %vm1468_vm11 = vmor %vm562_vm6, %vm563_vm0 }
 0x1a5   :  { %vm502_vm3 = vweird.f32 %v1183_v51  ;;  %v515_v53 = vmul.f32 %v1337_v1, %v514_v10  ;;  %v584_v41 = vor.u32 1.1754944e-38, %v583_v7  ;;  %vm533_vm12 = vweird.f32 %v1349_v19 }
 0x1a6   :  { %746 = vmatpush.bf16.msra.mxu2 %v702_v45  ;;  %vm547_vm10 = vweird.f32 %v1280_v62  ;;  %v553_v30 = vand.u32 2147483648, %v1280_v62  ;;  %v565_v60 = vsel %vm1468_vm11, %v1333_v48, %v561_v40  ;;  %vm582_vm13 = vcmp.eq.f32.partialorder %v581_v3, 8.507059e+37  ;;  %vm1498_vm7 = vmor %vm532_vm9, %vm533_vm12 }
 0x1a7   :  { %v531_v59 = vadd.f32 %v1349_v19, %v530_v61  ;;  %vm487_vm14 = vweird.f32 %v1179_v44  ;;  %v569_v0 = vor.u32 1.1754944e-38, %v568_v22  ;;  %v585_v11 = vsel %vm582_vm13, %v584_v41, %v580_v46  ;;  %vm1485_vm0 = vmor %vm547_vm10, %vm548_vm1 }
 0x1a8   :  { %v536_v21 = vand.u32 2147483647, %v1288_v8  ;;  %v538_v27 = vand.u32 2147483648, %v1288_v8  ;;  %vm567_vm2 = vcmp.eq.f32.partialorder %v566_v18, 8.507059e+37  ;;  %v550_v62 = vsel %vm1485_vm0, %v1344_v50, %v546_v16  ;;  %v707_v18 = vpop.permute.xlu1 %706  ;;  %v712_v16 = vpop.permute.xlu2 %711 }
 0x1a9   :  { %v516_v48 = vadd.f32 %v1337_v1, %v515_v53  ;;  %vm518_vm6 = vweird.f32 %v1337_v1  ;;  %v570_v57 = vsel %vm567_vm2, %v569_v0, %v565_v60  ;;  %v554_v28 = vor.u32 1.1754944e-38, %v553_v30  ;;  %v717_v30 = vpop.permute.xlu0 %716 }
 0x1aa   :  { %747 = vmatpush.bf16.msra.mxu2 %v701_v13  ;;  %v521_v32 = vand.u32 2147483647, %v1263_v56  ;;  %v523_v52 = vand.u32 2147483648, %v1263_v56  ;;  %v699_v20 = vpack.c.bf16 %v585_v11, %v570_v57  ;;  %v535_v50 = vsel %vm1498_vm7, %v1349_v19, %v531_v59  ;;  %vm1512_vm9 = vmor %vm517_vm5, %vm518_vm6 }
 0x1ab   :  { %vm552_vm1 = vcmp.eq.f32.partialorder %v551_v58, 8.507059e+37  ;;  %v501_v24 = vadd.f32 %v1214_v14, %v500_v55  ;;  %v539_v47 = vor.u32 1.1754944e-38, %v538_v27  ;;  %v506_v8 = vand.u32 2147483647, %v1183_v51  ;;  %vm1526_vm5 = vmor %vm502_vm3, %vm503_vm4 }
 0x1ac   :  { %v555_v31 = vsel %vm552_vm1, %v554_v28, %v550_v62  ;;  %v508_v34 = vand.u32 2147483648, %v1183_v51  ;;  %vm537_vm11 = vcmp.eq.f32.partialorder %v536_v21, 8.507059e+37  ;;  %v520_v19 = vsel %vm1512_vm9, %v1337_v1, %v516_v48  ;;  %vm1540_vm4 = vmor %vm472_vm8, %vm473_vm15 }
 0x1ad   :  { %v486_v39 = vadd.f32 %v1208_v6, %v1433_v54  ;;  %vm488_vm12 = vweird.f32 %v1208_v6  ;;  %v540_v9 = vsel %vm537_vm11, %v539_v47, %v535_v50  ;;  %v524_v45 = vor.u32 1.1754944e-38, %v523_v52 }
 0x1ae   :  { %748 = vmatpush.bf16.msra.mxu2 %v700_v4  ;;  %v471_v17 = vadd.f32 %v1197_v63, %v1250_v43  ;;  %v493_v1 = vand.u32 2147483648, %v1179_v44  ;;  %v698_v35 = vpack.c.bf16 %v555_v31, %v540_v9  ;;  %v505_v42 = vsel %vm1526_vm5, %v1214_v14, %v501_v24  ;;  %vm489_vm3 = vmor %vm487_vm14, %vm488_vm12  ;;  %v855_v4 = vld [vmem:[%s1584_s3 + $0x8] sm:$0xf] }
 0x1af   :  { %vm522_vm10 = vcmp.eq.f32.partialorder %v521_v32, 8.507059e+37  ;;  %v491_v15 = vand.u32 2147483647, %v1179_v44  ;;  %v509_v55 = vor.u32 1.1754944e-38, %v508_v34  ;;  %vm507_vm13 = vcmp.eq.f32.partialorder %v506_v8, 8.507059e+37 }
 0x1b0   :  { %v525_v43 = vsel %vm522_vm10, %v524_v45, %v520_v19  ;;  %v490_v14 = vsel %vm489_vm3, %v1208_v6, %v486_v39  ;;  %v1618_v12 = vand.u32 2147483648, %v1174_v38  ;;  %v494_v10 = vor.u32 1.1754944e-38, %v493_v1  ;;  %v870_v6 = vld [vmem:[%s1584_s3] sm:$0xff] }
 0x1b1   :  { %v510_v54 = vsel %vm507_vm13, %v509_v55, %v505_v42  ;;  %v475_v7 = vsel %vm1540_vm4, %v1197_v63, %v471_v17  ;;  %v1619_v61 = vand.u32 2147483647, %v1174_v38  ;;  %vm492_vm15 = vcmp.eq.f32.partialorder %v491_v15, 8.507059e+37  ;;  %v871_v38 = vld [vmem:[%s1584_s3 + $0x8] sm:$0x30] }
 0x1b2   :  { %749 = vmatpush.bf16.msra.mxu2 %v699_v20  ;;  %v479_v2 = vor.u32 1.1754944e-38, %v1618_v12  ;;  %v697_v13 = vpack.c.bf16 %v525_v43, %v510_v54  ;;  %v495_v44 = vsel %vm492_vm15, %v494_v10, %v490_v14  ;;  %vm734_vm14 = vcmask 982016  }
 0x1b3   :  { %vm477_vm8 = vcmp.eq.f32.partialorder %v1619_v61, 8.507059e+37  ;;  %v856_v63 = vor.u32 %v871_v38, %v855_v4 }
 0x1b4   :  { %v480_v40 = vsel %vm477_vm8, %v479_v2, %v475_v7 }
 0x1b5   :  { %v696_v3 = vpack.c.bf16 %v495_v44, %v480_v40 }
 0x1b6   :  { %750 = vmatpush.bf16.msra.mxu2 %v698_v35 }
 0x1ba   :  { %751 = vmatpush.bf16.msra.mxu2 %v697_v13 }
 0x1be   :  { %752 = vmatpush.bf16.msra.mxu2 %v696_v3 }
 0x1c1   :  { %857 = vmatmul.msk.bf16.vlgmr.msra.gmra.mxu2 %vm734_vm14, %v870_v6 }
 0x1d1   :  { %858 = vmatmul.msk.bf16.gmra.mxu2 %vm734_vm14, %v856_v63 }
 0x244   :  { %v754_v22 = vpop.f32.mrf.mxu2 }
 0x245   :  { %v755_v23 = vadd.f32 %v754_v22, %v707_v18 }
 0x247   :  { %v764_v46 = vadd.f32 %v755_v23, %v1122_v37  ;;  %v722_v37 = vpop.permute.xlu1 %721 }
 0x249   :  { %768 = vst [vmem:[%s1585_s5] sm:$0xff] %v764_v46 }
 0x24c   :  { %v756_v53 = vpop.f32.mrf.mxu2 }
 0x24d   :  { %v757_v29 = vadd.f32 %v756_v53, %v712_v16 }
 0x24f   :  { %v765_v41 = vadd.f32 %v757_v29, %v1120_v36 }
 0x251   :  { %769 = vst [vmem:[%s1585_s5 + $0x8] sm:$0xff] %v765_v41 }
 0x254   :  { %v759_v60 = vpop.f32.mrf.mxu2 }
 0x255   :  { %v760_v59 = vadd.f32 %v759_v60, %v717_v30 }
 0x257   :  { %v766_v58 = vadd.f32 %v760_v59, %v1099_v25 }
 0x259   :  { %770 = vst [vmem:[%s1585_s5 + $0x10] sm:$0xff] %v766_v58 }
 0x25c   :  { %v761_v0 = vpop.f32.mrf.mxu2 }
 0x25d   :  { %v762_v11 = vadd.f32 %v761_v0, %v722_v37 }
 0x25f   :  { %v767_v21 = vadd.f32 %v762_v11, %v1101_v26 }
 0x261   :  { %771 = vst [vmem:[%s1585_s5 + $0x18] sm:$0x7] %v767_v21 }

</bundles_post_ra>
